<compile_context>
chip_gen: v6e
topology: v6e:2x2x1
jax: 0.10.0
libtpu: 0.0.40
codegen_flags: <defaults>
</compile_context>

<pallas_src>
import jax
import jax.numpy as jnp
from jax.experimental import pallas as pl
from jax.experimental.pallas import tpu as pltpu


def _round_up(v, m):
    return (v + m - 1) // m * m


def _vmem_capacity_bytes():
    """Best-effort physical VMEM size; conservative fallback = 64 MiB (v7x/TC)."""
    try:
        info = pltpu.get_tpu_info()
        for name in ("vmem_capacity_bytes", "vmem_bytes", "vmem_size_bytes"):
            v = getattr(info, name, None)
            if v:
                return int(v)
    except Exception:
        pass
    return 64 * 1024 * 1024


def _vme_kernel(x_ref, we_ref, be_ref, wh_ref, bh_ref, eps_ref,
                z_ref, mean_ref, logvar_ref):
    """One batch tile: encoder + fused heads + reparameterize + L2 normalize."""
    out_pad = mean_ref.shape[-1]

    # Encoder: Linear + ReLU.  bf16 MXU operands, f32 accumulation.  x is cast
    # here (VPU, free slot) when the wrapper streamed it through un-cast.
    x = x_ref[...].astype(we_ref.dtype)
    feats = jnp.dot(x, we_ref[...], preferred_element_type=jnp.float32)
    feats = jnp.maximum(feats + be_ref[...], 0.0).astype(we_ref.dtype)

    # Fused fc_mean | fc_log_var head: one [tb, enc] @ [enc, 2*out] matmul.
    heads = (jnp.dot(feats, wh_ref[...], preferred_element_type=jnp.float32)
             + bh_ref[...])

    # Retire `heads` immediately: store both outputs, then rebuild z from the
    # stored (f32, lossless) slices so the wide f32 value is not live through
    # the epilogue (less vreg spill / peak VMEM).
    mean_ref[...] = heads[:, :out_pad].astype(mean_ref.dtype)
    logvar_ref[...] = heads[:, out_pad:].astype(logvar_ref.dtype)
    z_mean = mean_ref[...].astype(jnp.float32)
    z_log_var = logvar_ref[...].astype(jnp.float32)

    # Reparameterization: z = mu + eps * exp(log_var / 2)   (exp -> EUP slot)
    z = z_mean + eps_ref[...].astype(jnp.float32) * jnp.exp(z_log_var * 0.5)

    # F.normalize(z, p=2, dim=1): z / max(||z||_2, 1e-12).
    # rsqrt(max(sumsq, 1e-24)) == 1 / max(norm, 1e-12); rsqrt runs on the EUP.
    # Padded lanes are exactly zero (zero-padded weights/biases/eps), so the
    # norm is unaffected by lane padding.
    sumsq = jnp.sum(z * z, axis=-1, keepdims=True)
    inv = jax.lax.rsqrt(jnp.maximum(sumsq, 1e-24))
    z_ref[...] = (z * inv).astype(z_ref.dtype)


def _prep_stream(a, rows, cols, cast_dtype):
    """Zero-pad to (rows, cols).  Cast only when the pad already materializes a
    copy; otherwise stream as-is and let the kernel cast on the VPU."""
    r, c = a.shape
    if r == rows and c == cols:
        return a
    a = jnp.pad(a, ((0, rows - r), (0, cols - c)))
    return a.astype(cast_dtype)


def _pad2(a, rows, cols):
    r, c = a.shape
    if r == rows and c == cols:
        return a
    return jnp.pad(a, ((0, rows - r), (0, cols - c)))


def _vme_impl(x, params, eps, *, tb, normalized_dtype, single_buffer_weights):
    B, in_dim = x.shape
    enc_dim = params["we"].shape[1]
    out_dim = params["wm"].shape[1]

    # Lane-dense padding: multiples of 128 on every lane (last) axis.
    in_pad = _round_up(in_dim, 128)
    enc_pad = _round_up(enc_dim, 128)
    out_pad = _round_up(out_dim, 128)

    itemsize = lambda dt: jnp.dtype(dt).itemsize

    # ---------- chip-aware batch-tile selection ----------
    vmem_cap = _vmem_capacity_bytes()
    wbuf = 1 if single_buffer_weights else 2
    weight_bytes = wbuf * ((in_pad * enc_pad + enc_pad * 2 * out_pad) * 2
                           + (enc_pad + 2 * out_pad) * 4)
    # Streamed per-row bytes (conservative f32 estimate), x2 for double buffer.
    per_row = 2 * (in_pad * 4 + out_pad * 4 + 3 * out_pad * 4)
    budget = min(vmem_cap // 2, 32 << 20)

    if tb is None:
        tb = 512                               # 512-row tiles ~= 85% HBM roofline
        while tb > 8 and weight_bytes + tb * per_row > budget:
            tb //= 2                           # shrink on v7x-sized VMEM / big dims
        tb = max(tb, 8)
        if _round_up(B, 8) <= tb and B > 8:
            # Guarantee >= 2 grid steps so ("parallel",) can shard batch tiles
            # across the two TensorCores on v7x (near-neutral on v5e/v6e).
            tb = _round_up(-(-B // 2), 8)
        tb = min(tb, _round_up(B, 8))
    tb = max(8, _round_up(int(tb), 8))
    b_pad = _round_up(B, tb)
    grid = (pl.cdiv(b_pad, tb),)

    # ---------- operand prep (bf16 MXU operands, f32 biases) ----------
    x_p = _prep_stream(x, b_pad, in_pad, jnp.bfloat16)
    eps_p = _prep_stream(eps, b_pad, out_pad, jnp.bfloat16)  # zero pad -> padded z lanes = 0
    we_p = _pad2(params["we"].astype(jnp.bfloat16), in_pad, enc_pad)
    be_p = _pad2(params["be"], 1, enc_pad)
    wh_p = jnp.concatenate(
        [_pad2(params["wm"].astype(jnp.bfloat16), enc_pad, out_pad),
         _pad2(params["wl"].astype(jnp.bfloat16), enc_pad, out_pad)], axis=1)
    bh_p = jnp.concatenate(
        [_pad2(params["bm"], 1, out_pad), _pad2(params["bl"], 1, out_pad)], axis=1)

    # ---------- explicit VMEM budget (working set + 50% headroom) ----------
    stream_bytes = 2 * tb * (in_pad * itemsize(x_p.dtype)
                             + out_pad * itemsize(eps_p.dtype)
                             + out_pad * (itemsize(normalized_dtype) + 8))
    temp_bytes = tb * (enc_pad * 6 + out_pad * 12)  # feats f32+bf16, heads, z
    vmem_limit = int(min(vmem_cap * 9 // 10,
                         max((weight_bytes + stream_bytes + temp_bytes) * 3 // 2,
                             32 << 20)))

    # ---------- specs ----------
    if single_buffer_weights:
        # Constant-index blocks are only DMA'd once; single-buffering frees a
        # second full VMEM copy of the weights (key on v7x 64 MiB / v5e 16 MiB).
        def _wspec(shape):
            return pl.BlockSpec(shape, lambda i: (0, 0),
                                pipeline_mode=pl.Buffered(1))
    else:
        def _wspec(shape):
            return pl.BlockSpec(shape, lambda i: (0, 0))

    in_specs = [
        pl.BlockSpec((tb, in_pad), lambda i: (i, 0)),   # x tile   (streamed)
        _wspec((in_pad, enc_pad)),                      # We       (resident)
        _wspec((1, enc_pad)),                           # be       (resident)
        _wspec((enc_pad, 2 * out_pad)),                 # Wm|Wl    (resident)
        _wspec((1, 2 * out_pad)),                       # bm|bl    (resident)
        pl.BlockSpec((tb, out_pad), lambda i: (i, 0)),  # eps tile (streamed)
    ]
    out_specs = (
        pl.BlockSpec((tb, out_pad), lambda i: (i, 0)),
        pl.BlockSpec((tb, out_pad), lambda i: (i, 0)),
        pl.BlockSpec((tb, out_pad), lambda i: (i, 0)),
    )
    out_shapes = (
        jax.ShapeDtypeStruct((b_pad, out_pad), normalized_dtype),  # normalized z
        jax.ShapeDtypeStruct((b_pad, out_pad), jnp.float32),       # z_mean
        jax.ShapeDtypeStruct((b_pad, out_pad), jnp.float32),       # z_log_var
    )

    cost = pl.CostEstimate(
        flops=2 * b_pad * (in_pad * enc_pad + enc_pad * 2 * out_pad),
        transcendentals=2 * b_pad * out_pad,  # exp + rsqrt
        bytes_accessed=(x_p.size * itemsize(x_p.dtype)
                        + eps_p.size * itemsize(eps_p.dtype)
                        + we_p.size * 2 + wh_p.size * 2
                        + be_p.size * 4 + bh_p.size * 4
                        + b_pad * out_pad * (itemsize(normalized_dtype) + 8)),
    )

    z_n, z_mean, z_log_var = pl.pallas_call(
        _vme_kernel,
        out_shape=out_shapes,
        grid=grid,
        in_specs=in_specs,
        out_specs=out_specs,
        compiler_params=pltpu.CompilerParams(
            dimension_semantics=("parallel",),
            vmem_limit_bytes=vmem_limit),
        cost_estimate=cost,
    )(x_p, we_p, be_p, wh_p, bh_p, eps_p)

    # Strip batch / lane padding.
    return (z_n[:B, :out_dim], z_mean[:B, :out_dim], z_log_var[:B, :out_dim])


_vme_jit = jax.jit(_vme_impl, static_argnames=(
    "tb", "normalized_dtype", "single_buffer_weights"))


def variational_modality_encoder(x, params, eps, *, tb=None,
                                 normalized_dtype=jnp.float32):
    """x: [B, in_dim]. params: dict of weights. eps: [B, out_dim] ~ N(0,1).

    Returns (normalized_z, z_mean, z_log_var); mean/log_var are f32,
    normalized_z has `normalized_dtype` (f32 default, bf16 allowed).
    """
    try:
        return _vme_jit(x, params, eps, tb=tb, normalized_dtype=normalized_dtype,
                        single_buffer_weights=True)
    except Exception:
        # Fallback for runtimes that reject pipeline_mode=pl.Buffered(1) on
        # pallas_call BlockSpecs: weights are double-buffered instead.
        return _vme_jit(x, params, eps, tb=tb, normalized_dtype=normalized_dtype,
                        single_buffer_weights=False)


def init_params(key, in_dim, enc_dim, out_dim):
    ks = jax.random.split(key, 6)
    scale_e = 1.0 / jnp.sqrt(in_dim)
    scale_h = 1.0 / jnp.sqrt(enc_dim)
    return {
        # encoder Linear (in_dim -> enc_dim), stored [in, out]
        "we": jax.random.uniform(ks[0], (in_dim, enc_dim), jnp.float32,
                                 -scale_e, scale_e),
        "be": jax.random.uniform(ks[1], (1, enc_dim), jnp.float32,
                                 -scale_e, scale_e),
        # fc_mean (enc_dim -> out_dim)
        "wm": jax.random.uniform(ks[2], (enc_dim, out_dim), jnp.float32,
                                 -scale_h, scale_h),
        "bm": jax.random.uniform(ks[3], (1, out_dim), jnp.float32,
                                 -scale_h, scale_h),
        # fc_log_var (enc_dim -> out_dim)
        "wl": jax.random.uniform(ks[4], (enc_dim, out_dim), jnp.float32,
                                 -scale_h, scale_h),
        "bl": jax.random.uniform(ks[5], (1, out_dim), jnp.float32,
                                 -scale_h, scale_h),
    }


if __name__ == "__main__":
    key = jax.random.PRNGKey(0)
    k_x, k_p, k_eps = jax.random.split(key, 3)

    B, in_dim, enc_dim, out_dim = 2, 64, 32, 32
    x = jax.random.normal(k_x, (B, in_dim), jnp.float32)
    params = init_params(k_p, in_dim, enc_dim, out_dim)
    # eps generated outside the kernel so RNG is reproducible (torch.randn-like)
    eps = jax.random.normal(k_eps, (B, out_dim), jnp.float32)

    z_norm, z_mean, z_log_var = variational_modality_encoder(x, params, eps)
    jax.block_until_ready((z_norm, z_mean, z_log_var))

    # Pure-JAX reference with the SAME reduced-precision operands as the kernel
    # (bf16 x / eps / weights — padding forces those casts here — f32 biases
    # and f32 accumulation).
    xb = x.astype(jnp.bfloat16)
    eb = eps.astype(jnp.bfloat16).astype(jnp.float32)
    feats = jnp.maximum(
        jnp.dot(xb, params["we"].astype(jnp.bfloat16),
                preferred_element_type=jnp.float32) + params["be"], 0.0)
    fb = feats.astype(jnp.bfloat16)
    zm = jnp.dot(fb, params["wm"].astype(jnp.bfloat16),
                 preferred_element_type=jnp.float32) + params["bm"]
    zl = jnp.dot(fb, params["wl"].astype(jnp.bfloat16),
                 preferred_element_type=jnp.float32) + params["bl"]
    zz = zm + eb * jnp.exp(zl * 0.5)
    zn = zz * jax.lax.rsqrt(
        jnp.maximum(jnp.sum(zz * zz, axis=-1, keepdims=True), 1e-24))

    assert jnp.allclose(z_mean, zm, atol=2e-3, rtol=2e-3)
    assert jnp.allclose(z_log_var, zl, atol=2e-3, rtol=2e-3)
    assert jnp.allclose(z_norm, zn, atol=2e-3, rtol=2e-3)

    print("KERNEL_OK")
</pallas_src>

<mosaic_0001>
module attributes {stable_mosaic.version = 11 : i64} {
  func.func @_vme_kernel(%arg0: i32, %arg1: memref<8x128xbf16, #tpu.memory_space<vmem>>, %arg2: memref<128x128xbf16, #tpu.memory_space<vmem>>, %arg3: memref<1x128xf32, #tpu.memory_space<vmem>>, %arg4: memref<128x256xbf16, #tpu.memory_space<vmem>>, %arg5: memref<1x256xf32, #tpu.memory_space<vmem>>, %arg6: memref<8x128xbf16, #tpu.memory_space<vmem>>, %arg7: memref<8x128xf32, #tpu.memory_space<vmem>>, %arg8: memref<8x128xf32, #tpu.memory_space<vmem>>, %arg9: memref<8x128xf32, #tpu.memory_space<vmem>>) attributes {dimension_semantics = [#tpu.dimension_semantics<parallel>], iteration_bounds = array<i64: 1>, scalar_prefetch = 0 : i64, scratch_operands = 0 : i64, tpu.core_type = #tpu.core_type<tc>, window_params = [{transform_indices = @transform_0, window_bounds = array<i64: 8, 128>}, {pipeline_mode = #tpu.pipeline_mode<synchronous>, transform_indices = @transform_1, window_bounds = array<i64: 128, 128>}, {pipeline_mode = #tpu.pipeline_mode<synchronous>, transform_indices = @transform_2, window_bounds = array<i64: 1, 128>}, {pipeline_mode = #tpu.pipeline_mode<synchronous>, transform_indices = @transform_3, window_bounds = array<i64: 128, 256>}, {pipeline_mode = #tpu.pipeline_mode<synchronous>, transform_indices = @transform_4, window_bounds = array<i64: 1, 256>}, {transform_indices = @transform_5, window_bounds = array<i64: 8, 128>}, {transform_indices = @transform_6, window_bounds = array<i64: 8, 128>}, {transform_indices = @transform_7, window_bounds = array<i64: 8, 128>}, {transform_indices = @transform_8, window_bounds = array<i64: 8, 128>}]} {
    %c0 = arith.constant 0 : index
    %c0_0 = arith.constant 0 : index
    %0 = vector.load %arg1[%c0, %c0_0] : memref<8x128xbf16, #tpu.memory_space<vmem>>, vector<8x128xbf16>
    %c0_1 = arith.constant 0 : index
    %c0_2 = arith.constant 0 : index
    %1 = vector.load %arg2[%c0_1, %c0_2] : memref<128x128xbf16, #tpu.memory_space<vmem>>, vector<128x128xbf16>
    %cst = arith.constant dense<0.000000e+00> : vector<8x128xf32>
    %2 = tpu.matmul %0, %1, %cst {dimension_numbers = #tpu.dot_dimension_numbers<[1], [0], [0], [1], [0, 0, 1, 1], [], []>} : vector<8x128xbf16>, vector<128x128xbf16>, vector<8x128xf32> -> vector<8x128xf32>
    %c0_3 = arith.constant 0 : index
    %c0_4 = arith.constant 0 : index
    %3 = vector.load %arg3[%c0_3, %c0_4] : memref<1x128xf32, #tpu.memory_space<vmem>>, vector<1x128xf32>
    %4 = vector.broadcast %3 : vector<1x128xf32> to vector<8x128xf32>
    %5 = arith.addf %2, %4 : vector<8x128xf32>
    %cst_5 = arith.constant 0.000000e+00 : f32
    %6 = vector.broadcast %cst_5 : f32 to vector<8x128xf32>
    %7 = arith.maximumf %5, %6 : vector<8x128xf32>
    %8 = arith.truncf %7 : vector<8x128xf32> to vector<8x128xbf16>
    %c0_6 = arith.constant 0 : index
    %c0_7 = arith.constant 0 : index
    %9 = vector.load %arg4[%c0_6, %c0_7] : memref<128x256xbf16, #tpu.memory_space<vmem>>, vector<128x256xbf16>
    %cst_8 = arith.constant dense<0.000000e+00> : vector<8x256xf32>
    %10 = tpu.matmul %8, %9, %cst_8 {dimension_numbers = #tpu.dot_dimension_numbers<[1], [0], [0], [1], [0, 0, 1, 1], [], []>} : vector<8x128xbf16>, vector<128x256xbf16>, vector<8x256xf32> -> vector<8x256xf32>
    %c0_9 = arith.constant 0 : index
    %c0_10 = arith.constant 0 : index
    %11 = vector.load %arg5[%c0_9, %c0_10] : memref<1x256xf32, #tpu.memory_space<vmem>>, vector<1x256xf32>
    %12 = vector.broadcast %11 : vector<1x256xf32> to vector<8x256xf32>
    %13 = arith.addf %10, %12 : vector<8x256xf32>
    %14 = vector.extract_strided_slice %13 {offsets = [0, 0], sizes = [8, 128], strides = [1, 1]} : vector<8x256xf32> to vector<8x128xf32>
    %c0_11 = arith.constant 0 : index
    %c0_12 = arith.constant 0 : index
    %15 = vector.load %arg8[%c0_11, %c0_12] : memref<8x128xf32, #tpu.memory_space<vmem>>, vector<8x128xf32>
    tpu.vector_store %arg8[%c0_11, %c0_12], %14 {strides = array<i32>} : memref<8x128xf32, #tpu.memory_space<vmem>>, vector<8x128xf32>,
    %16 = vector.extract_strided_slice %13 {offsets = [0, 128], sizes = [8, 128], strides = [1, 1]} : vector<8x256xf32> to vector<8x128xf32>
    %c0_13 = arith.constant 0 : index
    %c0_14 = arith.constant 0 : index
    %17 = vector.load %arg9[%c0_13, %c0_14] : memref<8x128xf32, #tpu.memory_space<vmem>>, vector<8x128xf32>
    tpu.vector_store %arg9[%c0_13, %c0_14], %16 {strides = array<i32>} : memref<8x128xf32, #tpu.memory_space<vmem>>, vector<8x128xf32>,
    %c0_15 = arith.constant 0 : index
    %c0_16 = arith.constant 0 : index
    %18 = vector.load %arg8[%c0_15, %c0_16] : memref<8x128xf32, #tpu.memory_space<vmem>>, vector<8x128xf32>
    %c0_17 = arith.constant 0 : index
    %c0_18 = arith.constant 0 : index
    %19 = vector.load %arg9[%c0_17, %c0_18] : memref<8x128xf32, #tpu.memory_space<vmem>>, vector<8x128xf32>
    %c0_19 = arith.constant 0 : index
    %c0_20 = arith.constant 0 : index
    %20 = vector.load %arg6[%c0_19, %c0_20] : memref<8x128xbf16, #tpu.memory_space<vmem>>, vector<8x128xbf16>
    %21 = arith.extf %20 : vector<8x128xbf16> to vector<8x128xf32>
    %cst_21 = arith.constant 5.000000e-01 : f32
    %22 = vector.broadcast %cst_21 : f32 to vector<8x128xf32>
    %23 = arith.mulf %19, %22 : vector<8x128xf32>
    %24 = math.exp %23 : vector<8x128xf32>
    %25 = arith.mulf %21, %24 : vector<8x128xf32>
    %26 = arith.addf %18, %25 : vector<8x128xf32>
    %27 = arith.mulf %26, %26 : vector<8x128xf32>
    %cst_22 = arith.constant dense<0.000000e+00> : vector<8xf32>
    %28 = vector.multi_reduction <add>, %27, %cst_22 [1] : vector<8x128xf32> to vector<8xf32>
    %29 = vector.shape_cast %28 : vector<8xf32> to vector<8x1xf32>
    %cst_23 = arith.constant 1.000000e-24 : f32
    %30 = vector.broadcast %cst_23 : f32 to vector<8x1xf32>
    %31 = arith.maximumf %29, %30 : vector<8x1xf32>
    %32 = math.rsqrt %31 : vector<8x1xf32>
    %33 = vector.broadcast %32 : vector<8x1xf32> to vector<8x128xf32>
    %34 = arith.mulf %26, %33 : vector<8x128xf32>
    %c0_24 = arith.constant 0 : index
    %c0_25 = arith.constant 0 : index
    %35 = vector.load %arg7[%c0_24, %c0_25] : memref<8x128xf32, #tpu.memory_space<vmem>>, vector<8x128xf32>
    tpu.vector_store %arg7[%c0_24, %c0_25], %34 {strides = array<i32>} : memref<8x128xf32, #tpu.memory_space<vmem>>, vector<8x128xf32>,
    return
  }
  func.func @transform_0(%arg0: i32) -> (i32, i32) {
    %c0_i32 = arith.constant 0 : i32
    %c0_i32_0 = arith.constant 0 : i32
    return %arg0, %c0_i32 : i32, i32
  }
  func.func @transform_1(%arg0: i32) -> (i32, i32) {
    %c0_i32 = arith.constant 0 : i32
    %c0_i32_0 = arith.constant 0 : i32
    %c0_i32_1 = arith.constant 0 : i32
    return %c0_i32, %c0_i32_0 : i32, i32
  }
  func.func @transform_2(%arg0: i32) -> (i32, i32) {
    %c0_i32 = arith.constant 0 : i32
    %c0_i32_0 = arith.constant 0 : i32
    %c0_i32_1 = arith.constant 0 : i32
    return %c0_i32, %c0_i32_0 : i32, i32
  }
  func.func @transform_3(%arg0: i32) -> (i32, i32) {
    %c0_i32 = arith.constant 0 : i32
    %c0_i32_0 = arith.constant 0 : i32
    %c0_i32_1 = arith.constant 0 : i32
    return %c0_i32, %c0_i32_0 : i32, i32
  }
  func.func @transform_4(%arg0: i32) -> (i32, i32) {
    %c0_i32 = arith.constant 0 : i32
    %c0_i32_0 = arith.constant 0 : i32
    %c0_i32_1 = arith.constant 0 : i32
    return %c0_i32, %c0_i32_0 : i32, i32
  }
  func.func @transform_5(%arg0: i32) -> (i32, i32) {
    %c0_i32 = arith.constant 0 : i32
    %c0_i32_0 = arith.constant 0 : i32
    return %arg0, %c0_i32 : i32, i32
  }
  func.func @transform_6(%arg0: i32) -> (i32, i32) {
    %c0_i32 = arith.constant 0 : i32
    %c0_i32_0 = arith.constant 0 : i32
    return %arg0, %c0_i32 : i32, i32
  }
  func.func @transform_7(%arg0: i32) -> (i32, i32) {
    %c0_i32 = arith.constant 0 : i32
    %c0_i32_0 = arith.constant 0 : i32
    return %arg0, %c0_i32 : i32, i32
  }
  func.func @transform_8(%arg0: i32) -> (i32, i32) {
    %c0_i32 = arith.constant 0 : i32
    %c0_i32_0 = arith.constant 0 : i32
    return %arg0, %c0_i32 : i32, i32
  }
}

module attributes {stable_mosaic.version = 11 : i64} {
  func.func @_vme_kernel(%arg0: i32, %arg1: memref<8x128xbf16, #tpu.memory_space<vmem>>, %arg2: memref<128x128xbf16, #tpu.memory_space<vmem>>, %arg3: memref<1x128xf32, #tpu.memory_space<vmem>>, %arg4: memref<128x256xbf16, #tpu.memory_space<vmem>>, %arg5: memref<1x256xf32, #tpu.memory_space<vmem>>, %arg6: memref<8x128xbf16, #tpu.memory_space<vmem>>, %arg7: memref<8x128xf32, #tpu.memory_space<vmem>>, %arg8: memref<8x128xf32, #tpu.memory_space<vmem>>, %arg9: memref<8x128xf32, #tpu.memory_space<vmem>>) attributes {dimension_semantics = [#tpu.dimension_semantics<parallel>], iteration_bounds = array<i64: 1>, scalar_prefetch = 0 : i64, scratch_operands = 0 : i64, tpu.core_type = #tpu.core_type<tc>, window_params = [{transform_indices = @transform_0, window_bounds = array<i64: 8, 128>}, {pipeline_mode = #tpu.pipeline_mode<synchronous>, transform_indices = @transform_1, window_bounds = array<i64: 128, 128>}, {pipeline_mode = #tpu.pipeline_mode<synchronous>, transform_indices = @transform_2, window_bounds = array<i64: 1, 128>}, {pipeline_mode = #tpu.pipeline_mode<synchronous>, transform_indices = @transform_3, window_bounds = array<i64: 128, 256>}, {pipeline_mode = #tpu.pipeline_mode<synchronous>, transform_indices = @transform_4, window_bounds = array<i64: 1, 256>}, {transform_indices = @transform_5, window_bounds = array<i64: 8, 128>}, {transform_indices = @transform_6, window_bounds = array<i64: 8, 128>}, {transform_indices = @transform_7, window_bounds = array<i64: 8, 128>}, {transform_indices = @transform_8, window_bounds = array<i64: 8, 128>}]} {
    %c0 = arith.constant 0 : index
    %c0_0 = arith.constant 0 : index
    %0 = vector.load %arg1[%c0, %c0_0] : memref<8x128xbf16, #tpu.memory_space<vmem>>, vector<8x128xbf16>
    %c0_1 = arith.constant 0 : index
    %c0_2 = arith.constant 0 : index
    %1 = vector.load %arg2[%c0_1, %c0_2] : memref<128x128xbf16, #tpu.memory_space<vmem>>, vector<128x128xbf16>
    %cst = arith.constant dense<0.000000e+00> : vector<8x128xf32>
    %2 = tpu.matmul %0, %1, %cst {dimension_numbers = #tpu.dot_dimension_numbers<[1], [0], [0], [1], [0, 0, 1, 1], [], []>} : vector<8x128xbf16>, vector<128x128xbf16>, vector<8x128xf32> -> vector<8x128xf32>
    %c0_3 = arith.constant 0 : index
    %c0_4 = arith.constant 0 : index
    %3 = vector.load %arg3[%c0_3, %c0_4] : memref<1x128xf32, #tpu.memory_space<vmem>>, vector<1x128xf32>
    %4 = vector.broadcast %3 : vector<1x128xf32> to vector<8x128xf32>
    %5 = arith.addf %2, %4 : vector<8x128xf32>
    %cst_5 = arith.constant 0.000000e+00 : f32
    %6 = vector.broadcast %cst_5 : f32 to vector<8x128xf32>
    %7 = arith.maximumf %5, %6 : vector<8x128xf32>
    %8 = arith.truncf %7 : vector<8x128xf32> to vector<8x128xbf16>
    %c0_6 = arith.constant 0 : index
    %c0_7 = arith.constant 0 : index
    %9 = vector.load %arg4[%c0_6, %c0_7] : memref<128x256xbf16, #tpu.memory_space<vmem>>, vector<128x256xbf16>
    %cst_8 = arith.constant dense<0.000000e+00> : vector<8x256xf32>
    %10 = tpu.matmul %8, %9, %cst_8 {dimension_numbers = #tpu.dot_dimension_numbers<[1], [0], [0], [1], [0, 0, 1, 1], [], []>} : vector<8x128xbf16>, vector<128x256xbf16>, vector<8x256xf32> -> vector<8x256xf32>
    %c0_9 = arith.constant 0 : index
    %c0_10 = arith.constant 0 : index
    %11 = vector.load %arg5[%c0_9, %c0_10] : memref<1x256xf32, #tpu.memory_space<vmem>>, vector<1x256xf32>
    %12 = vector.broadcast %11 : vector<1x256xf32> to vector<8x256xf32>
    %13 = arith.addf %10, %12 : vector<8x256xf32>
    %14 = vector.extract_strided_slice %13 {offsets = [0, 0], sizes = [8, 128], strides = [1, 1]} : vector<8x256xf32> to vector<8x128xf32>
    %c0_11 = arith.constant 0 : index
    %c0_12 = arith.constant 0 : index
    %15 = vector.load %arg8[%c0_11, %c0_12] : memref<8x128xf32, #tpu.memory_space<vmem>>, vector<8x128xf32>
    tpu.vector_store %arg8[%c0_11, %c0_12], %14 {strides = array<i32>} : memref<8x128xf32, #tpu.memory_space<vmem>>, vector<8x128xf32>,
    %16 = vector.extract_strided_slice %13 {offsets = [0, 128], sizes = [8, 128], strides = [1, 1]} : vector<8x256xf32> to vector<8x128xf32>
    %c0_13 = arith.constant 0 : index
    %c0_14 = arith.constant 0 : index
    %17 = vector.load %arg9[%c0_13, %c0_14] : memref<8x128xf32, #tpu.memory_space<vmem>>, vector<8x128xf32>
    tpu.vector_store %arg9[%c0_13, %c0_14], %16 {strides = array<i32>} : memref<8x128xf32, #tpu.memory_space<vmem>>, vector<8x128xf32>,
    %c0_15 = arith.constant 0 : index
    %c0_16 = arith.constant 0 : index
    %18 = vector.load %arg8[%c0_15, %c0_16] : memref<8x128xf32, #tpu.memory_space<vmem>>, vector<8x128xf32>
    %c0_17 = arith.constant 0 : index
    %c0_18 = arith.constant 0 : index
    %19 = vector.load %arg9[%c0_17, %c0_18] : memref<8x128xf32, #tpu.memory_space<vmem>>, vector<8x128xf32>
    %c0_19 = arith.constant 0 : index
    %c0_20 = arith.constant 0 : index
    %20 = vector.load %arg6[%c0_19, %c0_20] : memref<8x128xbf16, #tpu.memory_space<vmem>>, vector<8x128xbf16>
    %21 = arith.extf %20 : vector<8x128xbf16> to vector<8x128xf32>
    %cst_21 = arith.constant 5.000000e-01 : f32
    %22 = vector.broadcast %cst_21 : f32 to vector<8x128xf32>
    %23 = arith.mulf %19, %22 : vector<8x128xf32>
    %24 = math.exp %23 : vector<8x128xf32>
    %25 = arith.mulf %21, %24 : vector<8x128xf32>
    %26 = arith.addf %18, %25 : vector<8x128xf32>
    %27 = arith.mulf %26, %26 : vector<8x128xf32>
    %cst_22 = arith.constant dense<0.000000e+00> : vector<8xf32>
    %28 = vector.multi_reduction <add>, %27, %cst_22 [1] : vector<8x128xf32> to vector<8xf32>
    %29 = vector.shape_cast %28 : vector<8xf32> to vector<8x1xf32>
    %cst_23 = arith.constant 1.000000e-24 : f32
    %30 = vector.broadcast %cst_23 : f32 to vector<8x1xf32>
    %31 = arith.maximumf %29, %30 : vector<8x1xf32>
    %32 = math.rsqrt %31 : vector<8x1xf32>
    %33 = vector.broadcast %32 : vector<8x1xf32> to vector<8x128xf32>
    %34 = arith.mulf %26, %33 : vector<8x128xf32>
    %c0_24 = arith.constant 0 : index
    %c0_25 = arith.constant 0 : index
    %35 = vector.load %arg7[%c0_24, %c0_25] : memref<8x128xf32, #tpu.memory_space<vmem>>, vector<8x128xf32>
    tpu.vector_store %arg7[%c0_24, %c0_25], %34 {strides = array<i32>} : memref<8x128xf32, #tpu.memory_space<vmem>>, vector<8x128xf32>,
    return
  }
  func.func @transform_0(%arg0: i32) -> (i32, i32) {
    %c0_i32 = arith.constant 0 : i32
    %c0_i32_0 = arith.constant 0 : i32
    return %arg0, %c0_i32 : i32, i32
  }
  func.func @transform_1(%arg0: i32) -> (i32, i32) {
    %c0_i32 = arith.constant 0 : i32
    %c0_i32_0 = arith.constant 0 : i32
    %c0_i32_1 = arith.constant 0 : i32
    return %c0_i32, %c0_i32_0 : i32, i32
  }
  func.func @transform_2(%arg0: i32) -> (i32, i32) {
    %c0_i32 = arith.constant 0 : i32
    %c0_i32_0 = arith.constant 0 : i32
    %c0_i32_1 = arith.constant 0 : i32
    return %c0_i32, %c0_i32_0 : i32, i32
  }
  func.func @transform_3(%arg0: i32) -> (i32, i32) {
    %c0_i32 = arith.constant 0 : i32
    %c0_i32_0 = arith.constant 0 : i32
    %c0_i32_1 = arith.constant 0 : i32
    return %c0_i32, %c0_i32_0 : i32, i32
  }
  func.func @transform_4(%arg0: i32) -> (i32, i32) {
    %c0_i32 = arith.constant 0 : i32
    %c0_i32_0 = arith.constant 0 : i32
    %c0_i32_1 = arith.constant 0 : i32
    return %c0_i32, %c0_i32_0 : i32, i32
  }
  func.func @transform_5(%arg0: i32) -> (i32, i32) {
    %c0_i32 = arith.constant 0 : i32
    %c0_i32_0 = arith.constant 0 : i32
    return %arg0, %c0_i32 : i32, i32
  }
  func.func @transform_6(%arg0: i32) -> (i32, i32) {
    %c0_i32 = arith.constant 0 : i32
    %c0_i32_0 = arith.constant 0 : i32
    return %arg0, %c0_i32 : i32, i32
  }
  func.func @transform_7(%arg0: i32) -> (i32, i32) {
    %c0_i32 = arith.constant 0 : i32
    %c0_i32_0 = arith.constant 0 : i32
    return %arg0, %c0_i32 : i32, i32
  }
  func.func @transform_8(%arg0: i32) -> (i32, i32) {
    %c0_i32 = arith.constant 0 : i32
    %c0_i32_0 = arith.constant 0 : i32
    return %arg0, %c0_i32 : i32, i32
  }
}

</mosaic_0001>

<bundles_post_ra>
// kernel: _vme_impl.1
= control target key start
LH: loop header
LB: loop body
LE: loop exit
PB: predicated region body
PF: predicated region fallthrough
CT: control target
= control target key end

     0   :  { %v413_v0 = vmov 0.0   ;;  %vm414_vm0 = vmmov 0   ;;  %v415_v26 = vmov 0   ;;  %v159_v35 = vlaneseq  ;;  %s554_s1 = inlined_call_operand.vmem [shape: bf16[128,128], index: 1, kind: input, shape index: {}]   ;;  %s555_s3 = inlined_call_operand.vmem [shape: bf16[128,256], index: 3, kind: input, shape index: {}]   ;;  %s556_s0 = inlined_call_operand.vmem [shape: bf16[8,128], index: 0, kind: input, shape index: {}]   ;;  %s557_s2 = inlined_call_operand.vmem [shape: f32[1,128], index: 2, kind: input, shape index: {}]   ;;  %s558_s4 = inlined_call_operand.vmem [shape: f32[1,256], index: 4, kind: input, shape index: {}]   ;;  %s559_s7 = inlined_call_operand.vmem [shape: f32[8,128], index: 7, kind: output, shape index: {1}]   ;;  %s560_s8 = inlined_call_operand.vmem [shape: f32[8,128], index: 8, kind: output, shape index: {2}]   ;;  %s561_s5 = inlined_call_operand.vmem [shape: bf16[8,128], index: 5, kind: input, shape index: {}]   ;;  %s562_s6 = inlined_call_operand.vmem [shape: f32[8,128], index: 6, kind: output, shape index: {0}]  }
   0x1   :  { %354 = vmatprep.subr.bf16.mxu0 %v413_v0  ;;  %v377_v1 = vld [vmem:[%s554_s1 + $0x38] sm:$0xff]   ;;  %370 = vmatprep.mubr.msk.bf16.mxu0 %vm414_vm0, %v413_v0  ;;  %v378_v2 = vld [vmem:[%s554_s1 + $0x30] sm:$0xff]   ;;  %v379_v3 = vld [vmem:[%s554_s1 + $0x28] sm:$0xff]  }
   0x2   :  { %355 = vmatpush3.bf16.msra.mxu0 %v377_v1  ;;  %v385_v4 = vld [vmem:[%s555_s3 + $0x74] ss:$8 sps:$4 sm:$0xff]   ;;  %v387_v5 = vld [vmem:[%s555_s3 + $0x70] ss:$8 sps:$4 sm:$0xff]   ;;  %v380_v6 = vld [vmem:[%s554_s1 + $0x20] sm:$0xff]   ;;  %281 = vmatprep.mubr.bf16.mxu1 %v415_v26  ;;  %v160_v36 = vshrl.u32 %v159_v35, 7 }
   0x3   :  { %356 = vmatprep.subr.bf16.mxu0 %v413_v0  ;;  %v388_v7 = vld [vmem:[%s555_s3 + $0x64] ss:$8 sps:$4 sm:$0xff]   ;;  %249 = vmatprep.subr.bf16.mxu1 %v385_v4  ;;  %v390_v8 = vld [vmem:[%s555_s3 + $0x60] ss:$8 sps:$4 sm:$0xff]   ;;  %v391_v9 = vld [vmem:[%s555_s3 + $0x54] ss:$8 sps:$4 sm:$0xff]  }
   0x4   :  { %250 = vmatpush1.bf16.msra.mxu1 %v387_v5  ;;  %v381_v10 = vld [vmem:[%s554_s1 + $0x18] sm:$0xff]   ;;  %v394_v12 = vld [vmem:[%s555_s3 + $0x44] ss:$8 sps:$4 sm:$0xff]   ;;  %v382_v13 = vld [vmem:[%s554_s1 + $0x10] sm:$0xff]   ;;  %v161_v37 = vsub.s32 0, %v160_v36  ;;  %v165_v39 = vsub.s32 1, %v160_v36 }
   0x5   :  { %251 = vmatprep.subr.bf16.mxu1 %v388_v7  ;;  %v393_v11 = vld [vmem:[%s555_s3 + $0x50] ss:$8 sps:$4 sm:$0xff]   ;;  %v396_v14 = vld [vmem:[%s555_s3 + $0x40] ss:$8 sps:$4 sm:$0xff]   ;;  %v397_v15 = vld [vmem:[%s555_s3 + $0x34] ss:$8 sps:$4 sm:$0xff]  }
   0x6   :  { %357 = vmatpush3.bf16.msra.mxu0 %v378_v2  ;;  %v383_v16 = vld [vmem:[%s554_s1 + $0x8] sm:$0xff]   ;;  %v399_v17 = vld [vmem:[%s555_s3 + $0x30] ss:$8 sps:$4 sm:$0xff]   ;;  %v384_v19 = vld [vmem:[%s554_s1] sm:$0xff]  }
   0x7   :  { %358 = vmatprep.subr.bf16.mxu0 %v413_v0  ;;  %v400_v18 = vld [vmem:[%s555_s3 + $0x24] ss:$8 sps:$4 sm:$0xff]   ;;  %v402_v20 = vld [vmem:[%s555_s3 + $0x20] ss:$8 sps:$4 sm:$0xff]   ;;  %v403_v21 = vld [vmem:[%s555_s3 + $0x14] ss:$8 sps:$4 sm:$0xff]  }
   0x8   :  { %252 = vmatpush1.bf16.msra.mxu1 %v390_v8  ;;  %v27_v22 = vld [vmem:[%s556_s0] sm:$0xf]  ;;  %v405_v23 = vld [vmem:[%s555_s3 + $0x10] ss:$8 sps:$4 sm:$0xff]   ;;  %v406_v24 = vld [vmem:[%s555_s3 + $0x4] ss:$8 sps:$4 sm:$0xff]  }
   0x9   :  { %253 = vmatprep.subr.bf16.mxu1 %v391_v9  ;;  %v408_v25 = vld [vmem:[%s555_s3] ss:$8 sps:$4 sm:$0xff]  }
   0xa   :  { %359 = vmatpush3.bf16.msra.mxu0 %v379_v3  ;;  %v320_v27 = vld [vmem:[%s557_s2] ss:$0 sm:$0xff] }
   0xb   :  { %360 = vmatprep.subr.bf16.mxu0 %v413_v0  ;;  %v157_v38 = vld [vmem:[%s558_s4] sm:$0x3] }
   0xc   :  { %254 = vmatpush1.bf16.msra.mxu1 %v393_v11  ;;  %v162_v40 = vrot.slane %v157_v38, %v161_v37  ;;  %v166_v41 = vrot.slane %v157_v38, %v165_v39  ;;  %v294_v50 = vld [vmem:[%s561_s5] sm:$0xf] }
   0xd   :  { %255 = vmatprep.subr.bf16.mxu1 %v394_v12  ;;  %v295_v51 = vunpack.c.l.bf16 %v294_v50 }
   0xe   :  { %361 = vmatpush3.bf16.msra.mxu0 %v380_v6 }
   0xf   :  { %362 = vmatprep.subr.bf16.mxu0 %v413_v0 }
  0x10   :  { %256 = vmatpush1.bf16.msra.mxu1 %v396_v14 }
  0x11   :  { %257 = vmatprep.subr.bf16.mxu1 %v397_v15 }
  0x12   :  { %363 = vmatpush3.bf16.msra.mxu0 %v381_v10 }
  0x13   :  { %364 = vmatprep.subr.bf16.mxu0 %v413_v0 }
  0x14   :  { %258 = vmatpush1.bf16.msra.mxu1 %v399_v17 }
  0x15   :  { %259 = vmatprep.subr.bf16.mxu1 %v400_v18 }
  0x16   :  { %365 = vmatpush3.bf16.msra.mxu0 %v382_v13 }
  0x17   :  { %366 = vmatprep.subr.bf16.mxu0 %v413_v0 }
  0x18   :  { %260 = vmatpush1.bf16.msra.mxu1 %v402_v20 }
  0x19   :  { %261 = vmatprep.subr.bf16.mxu1 %v403_v21 }
  0x1a   :  { %367 = vmatpush3.bf16.msra.mxu0 %v383_v16 }
  0x1b   :  { %368 = vmatprep.subr.bf16.mxu0 %v413_v0 }
  0x1c   :  { %262 = vmatpush1.bf16.msra.mxu1 %v405_v23 }
  0x1d   :  { %263 = vmatprep.subr.bf16.mxu1 %v406_v24 }
  0x1e   :  { %369 = vmatpush3.bf16.msra.mxu0 %v384_v19 }
  0x20   :  { %264 = vmatpush1.bf16.msra.mxu1 %v408_v25 }
  0x21   :  { %371 = vmatmul.mubr.bf16.vlgmr.msra.gmra.mxu0 %v27_v22 }
  0xe1   :  { %v133_v28 = vpop.f32.mrf.mxu0 }
  0xe2   :  { %v134_v29 = vadd.f32 %v320_v27, %v133_v28 }
  0xe3   :  { %v372_v30 = vpop.f32.mrf.mxu0 }
  0xe4   :  { %v139_v31 = vmax.f32 %v134_v29, 0.0 }
  0xe5   :  { %v136_v32 = vpop.f32.mrf.mxu0 }
  0xe6   :  { %v140_v33 = vpack.c.bf16 %v139_v31, %v139_v31 }
  0xe7   :  { %v373_v34 = vpop.f32.mrf.mxu0 }
  0xe8   :  { %282 = vmatmul.mubr.bf16.vlgmr.msra.gmra.mxu1 %v140_v33 }
 0x1a8   :  { %v283_v42 = vpop.f32.mrf.mxu1 }
 0x1a9   :  { %v284_v43 = vadd.f32 %v283_v42, %v162_v40 }
 0x1aa   :  { %v285_v44 = vpop.f32.mrf.mxu1 }
 0x1ab   :  { %290 = vst [vmem:[%s559_s7] sm:$0xff] %v284_v43  ;;  %v286_v45 = vadd.f32 %v285_v44, %v166_v41 }
 0x1ac   :  { %v287_v46 = vpop.f32.mrf.mxu1 }
 0x1ad   :  { %291 = vst [vmem:[%s560_s8] sm:$0xff] %v286_v45  ;;  %v296_v47 = vmul.f32 0.5, %v286_v45 }
 0x1ae   :  { %v288_v48 = vpop.f32.mrf.mxu1 }
 0x1af   :  { %v297_v49 = vmul.f32 1.442695, %v296_v47 }
 0x1b1   :  { %409 = vpow2.f32 %v297_v49 }
 0x1be   :  { %v410_v52 = vpop.eup %409 }
 0x1bf   :  { %v299_v53 = vmul.f32 %v410_v52, %v295_v51 }
 0x1c1   :  { %v300_v54 = vadd.f32 %v299_v53, %v284_v43 }
 0x1c3   :  { %v301_v55 = vmul.f32 %v300_v54, %v300_v54 }
 0x1c5   :  { %302 = vadd.xlane.f32.xlu0 %v301_v55 }
 0x24e   :  { %v303_v56 = vpop.xlane.xlu0 %302 }
 0x24f   :  { %v304_v57 = vmax.f32 %v303_v56, 1e-24 }
 0x251   :  { %411 = vrsqrt.f32 %v304_v57 }
 0x25e   :  { %v412_v58 = vpop.eup %411 }
 0x25f   :  { %v306_v59 = vmul.f32 %v412_v58, %v300_v54 }
 0x261   :  { %307 = vst [vmem:[%s562_s6] sm:$0xff] %v306_v59 }

// kernel: _vme_impl.1
= control target key start
LH: loop header
LB: loop body
LE: loop exit
PB: predicated region body
PF: predicated region fallthrough
CT: control target
= control target key end

     0   :  { %v413_v0 = vmov 0.0   ;;  %vm414_vm0 = vmmov 0   ;;  %v415_v26 = vmov 0   ;;  %v159_v35 = vlaneseq  ;;  %s554_s1 = inlined_call_operand.vmem [shape: bf16[128,128], index: 1, kind: input, shape index: {}]   ;;  %s555_s3 = inlined_call_operand.vmem [shape: bf16[128,256], index: 3, kind: input, shape index: {}]   ;;  %s556_s0 = inlined_call_operand.vmem [shape: bf16[8,128], index: 0, kind: input, shape index: {}]   ;;  %s557_s2 = inlined_call_operand.vmem [shape: f32[1,128], index: 2, kind: input, shape index: {}]   ;;  %s558_s4 = inlined_call_operand.vmem [shape: f32[1,256], index: 4, kind: input, shape index: {}]   ;;  %s559_s7 = inlined_call_operand.vmem [shape: f32[8,128], index: 7, kind: output, shape index: {1}]   ;;  %s560_s8 = inlined_call_operand.vmem [shape: f32[8,128], index: 8, kind: output, shape index: {2}]   ;;  %s561_s5 = inlined_call_operand.vmem [shape: bf16[8,128], index: 5, kind: input, shape index: {}]   ;;  %s562_s6 = inlined_call_operand.vmem [shape: f32[8,128], index: 6, kind: output, shape index: {0}]  }
   0x1   :  { %354 = vmatprep.subr.bf16.mxu0 %v413_v0  ;;  %v377_v1 = vld [vmem:[%s554_s1 + $0x38] sm:$0xff]   ;;  %370 = vmatprep.mubr.msk.bf16.mxu0 %vm414_vm0, %v413_v0  ;;  %v378_v2 = vld [vmem:[%s554_s1 + $0x30] sm:$0xff]   ;;  %v379_v3 = vld [vmem:[%s554_s1 + $0x28] sm:$0xff]  }
   0x2   :  { %355 = vmatpush3.bf16.msra.mxu0 %v377_v1  ;;  %v385_v4 = vld [vmem:[%s555_s3 + $0x74] ss:$8 sps:$4 sm:$0xff]   ;;  %v387_v5 = vld [vmem:[%s555_s3 + $0x70] ss:$8 sps:$4 sm:$0xff]   ;;  %v380_v6 = vld [vmem:[%s554_s1 + $0x20] sm:$0xff]   ;;  %281 = vmatprep.mubr.bf16.mxu1 %v415_v26  ;;  %v160_v36 = vshrl.u32 %v159_v35, 7 }
   0x3   :  { %356 = vmatprep.subr.bf16.mxu0 %v413_v0  ;;  %v388_v7 = vld [vmem:[%s555_s3 + $0x64] ss:$8 sps:$4 sm:$0xff]   ;;  %249 = vmatprep.subr.bf16.mxu1 %v385_v4  ;;  %v390_v8 = vld [vmem:[%s555_s3 + $0x60] ss:$8 sps:$4 sm:$0xff]   ;;  %v391_v9 = vld [vmem:[%s555_s3 + $0x54] ss:$8 sps:$4 sm:$0xff]  }
   0x4   :  { %250 = vmatpush1.bf16.msra.mxu1 %v387_v5  ;;  %v381_v10 = vld [vmem:[%s554_s1 + $0x18] sm:$0xff]   ;;  %v394_v12 = vld [vmem:[%s555_s3 + $0x44] ss:$8 sps:$4 sm:$0xff]   ;;  %v382_v13 = vld [vmem:[%s554_s1 + $0x10] sm:$0xff]   ;;  %v161_v37 = vsub.s32 0, %v160_v36  ;;  %v165_v39 = vsub.s32 1, %v160_v36 }
   0x5   :  { %251 = vmatprep.subr.bf16.mxu1 %v388_v7  ;;  %v393_v11 = vld [vmem:[%s555_s3 + $0x50] ss:$8 sps:$4 sm:$0xff]   ;;  %v396_v14 = vld [vmem:[%s555_s3 + $0x40] ss:$8 sps:$4 sm:$0xff]   ;;  %v397_v15 = vld [vmem:[%s555_s3 + $0x34] ss:$8 sps:$4 sm:$0xff]  }
   0x6   :  { %357 = vmatpush3.bf16.msra.mxu0 %v378_v2  ;;  %v383_v16 = vld [vmem:[%s554_s1 + $0x8] sm:$0xff]   ;;  %v399_v17 = vld [vmem:[%s555_s3 + $0x30] ss:$8 sps:$4 sm:$0xff]   ;;  %v384_v19 = vld [vmem:[%s554_s1] sm:$0xff]  }
   0x7   :  { %358 = vmatprep.subr.bf16.mxu0 %v413_v0  ;;  %v400_v18 = vld [vmem:[%s555_s3 + $0x24] ss:$8 sps:$4 sm:$0xff]   ;;  %v402_v20 = vld [vmem:[%s555_s3 + $0x20] ss:$8 sps:$4 sm:$0xff]   ;;  %v403_v21 = vld [vmem:[%s555_s3 + $0x14] ss:$8 sps:$4 sm:$0xff]  }
   0x8   :  { %252 = vmatpush1.bf16.msra.mxu1 %v390_v8  ;;  %v27_v22 = vld [vmem:[%s556_s0] sm:$0xf]  ;;  %v405_v23 = vld [vmem:[%s555_s3 + $0x10] ss:$8 sps:$4 sm:$0xff]   ;;  %v406_v24 = vld [vmem:[%s555_s3 + $0x4] ss:$8 sps:$4 sm:$0xff]  }
   0x9   :  { %253 = vmatprep.subr.bf16.mxu1 %v391_v9  ;;  %v408_v25 = vld [vmem:[%s555_s3] ss:$8 sps:$4 sm:$0xff]  }
   0xa   :  { %359 = vmatpush3.bf16.msra.mxu0 %v379_v3  ;;  %v320_v27 = vld [vmem:[%s557_s2] ss:$0 sm:$0xff] }
   0xb   :  { %360 = vmatprep.subr.bf16.mxu0 %v413_v0  ;;  %v157_v38 = vld [vmem:[%s558_s4] sm:$0x3] }
   0xc   :  { %254 = vmatpush1.bf16.msra.mxu1 %v393_v11  ;;  %v162_v40 = vrot.slane %v157_v38, %v161_v37  ;;  %v166_v41 = vrot.slane %v157_v38, %v165_v39  ;;  %v294_v50 = vld [vmem:[%s561_s5] sm:$0xf] }
   0xd   :  { %255 = vmatprep.subr.bf16.mxu1 %v394_v12  ;;  %v295_v51 = vunpack.c.l.bf16 %v294_v50 }
   0xe   :  { %361 = vmatpush3.bf16.msra.mxu0 %v380_v6 }
   0xf   :  { %362 = vmatprep.subr.bf16.mxu0 %v413_v0 }
  0x10   :  { %256 = vmatpush1.bf16.msra.mxu1 %v396_v14 }
  0x11   :  { %257 = vmatprep.subr.bf16.mxu1 %v397_v15 }
  0x12   :  { %363 = vmatpush3.bf16.msra.mxu0 %v381_v10 }
  0x13   :  { %364 = vmatprep.subr.bf16.mxu0 %v413_v0 }
  0x14   :  { %258 = vmatpush1.bf16.msra.mxu1 %v399_v17 }
  0x15   :  { %259 = vmatprep.subr.bf16.mxu1 %v400_v18 }
  0x16   :  { %365 = vmatpush3.bf16.msra.mxu0 %v382_v13 }
  0x17   :  { %366 = vmatprep.subr.bf16.mxu0 %v413_v0 }
  0x18   :  { %260 = vmatpush1.bf16.msra.mxu1 %v402_v20 }
  0x19   :  { %261 = vmatprep.subr.bf16.mxu1 %v403_v21 }
  0x1a   :  { %367 = vmatpush3.bf16.msra.mxu0 %v383_v16 }
  0x1b   :  { %368 = vmatprep.subr.bf16.mxu0 %v413_v0 }
  0x1c   :  { %262 = vmatpush1.bf16.msra.mxu1 %v405_v23 }
  0x1d   :  { %263 = vmatprep.subr.bf16.mxu1 %v406_v24 }
  0x1e   :  { %369 = vmatpush3.bf16.msra.mxu0 %v384_v19 }
  0x20   :  { %264 = vmatpush1.bf16.msra.mxu1 %v408_v25 }
  0x21   :  { %371 = vmatmul.mubr.bf16.vlgmr.msra.gmra.mxu0 %v27_v22 }
  0xe1   :  { %v133_v28 = vpop.f32.mrf.mxu0 }
  0xe2   :  { %v134_v29 = vadd.f32 %v320_v27, %v133_v28 }
  0xe3   :  { %v372_v30 = vpop.f32.mrf.mxu0 }
  0xe4   :  { %v139_v31 = vmax.f32 %v134_v29, 0.0 }
  0xe5   :  { %v136_v32 = vpop.f32.mrf.mxu0 }
  0xe6   :  { %v140_v33 = vpack.c.bf16 %v139_v31, %v139_v31 }
  0xe7   :  { %v373_v34 = vpop.f32.mrf.mxu0 }
  0xe8   :  { %282 = vmatmul.mubr.bf16.vlgmr.msra.gmra.mxu1 %v140_v33 }
 0x1a8   :  { %v283_v42 = vpop.f32.mrf.mxu1 }
 0x1a9   :  { %v284_v43 = vadd.f32 %v283_v42, %v162_v40 }
 0x1aa   :  { %v285_v44 = vpop.f32.mrf.mxu1 }
 0x1ab   :  { %290 = vst [vmem:[%s559_s7] sm:$0xff] %v284_v43  ;;  %v286_v45 = vadd.f32 %v285_v44, %v166_v41 }
 0x1ac   :  { %v287_v46 = vpop.f32.mrf.mxu1 }
 0x1ad   :  { %291 = vst [vmem:[%s560_s8] sm:$0xff] %v286_v45  ;;  %v296_v47 = vmul.f32 0.5, %v286_v45 }
 0x1ae   :  { %v288_v48 = vpop.f32.mrf.mxu1 }
 0x1af   :  { %v297_v49 = vmul.f32 1.442695, %v296_v47 }
 0x1b1   :  { %409 = vpow2.f32 %v297_v49 }
 0x1be   :  { %v410_v52 = vpop.eup %409 }
 0x1bf   :  { %v299_v53 = vmul.f32 %v410_v52, %v295_v51 }
 0x1c1   :  { %v300_v54 = vadd.f32 %v299_v53, %v284_v43 }
 0x1c3   :  { %v301_v55 = vmul.f32 %v300_v54, %v300_v54 }
 0x1c5   :  { %302 = vadd.xlane.f32.xlu0 %v301_v55 }
 0x24e   :  { %v303_v56 = vpop.xlane.xlu0 %302 }
 0x24f   :  { %v304_v57 = vmax.f32 %v303_v56, 1e-24 }
 0x251   :  { %411 = vrsqrt.f32 %v304_v57 }
 0x25e   :  { %v412_v58 = vpop.eup %411 }
 0x25f   :  { %v306_v59 = vmul.f32 %v412_v58, %v300_v54 }
 0x261   :  { %307 = vst [vmem:[%s562_s6] sm:$0xff] %v306_v59 }

</bundles_post_ra>
